<compile_context>
chip_gen: v7x
topology: tpu7x:2x2x1
jax: 0.10.0
libtpu: 0.0.40
codegen_flags: <defaults>
</compile_context>

<pallas_src>
import functools

import jax
import jax.numpy as jnp
from jax.experimental import pallas as pl
from jax.experimental.pallas import tpu as pltpu


def _layernorm(x, gamma, beta, eps=1e-5):
    x = x.astype(jnp.float32)
    mean = jnp.mean(x, axis=-1, keepdims=True)
    var = jnp.mean((x - mean) ** 2, axis=-1, keepdims=True)
    return (x - mean) * jax.lax.rsqrt(var + eps) * gamma + beta


def block_kernel(xq_ref, xkv_ref, ln1_g_ref, ln1_b_ref, wqkv_ref, wp_ref,
                 bp_ref, ln2_g_ref, ln2_b_ref, w1_ref, b1_ref, w2_ref, b2_ref,
                 o_ref, *, num_heads, head_dim, head_size, q_block, seq_len,
                 compute_dtype):
    nh, hd, HS = num_heads, head_dim, head_size
    tq, T = q_block, seq_len
    nq = T // tq                       # static
    cdt = compute_dtype                # bf16 MXU operands, f32 accumulation
    f32 = jnp.float32

    q_start = pl.program_id(1) * tq    # global row offset of this query tile

    x_kv = xkv_ref[...].astype(f32)                       # (T, C) full sequence
    x_q = x_kv if nq == 1 else xq_ref[...].astype(f32)    # (tq, C) query rows

    # ---- ln1 + fused QKV projection ----
    g1, b1 = ln1_g_ref[0], ln1_b_ref[0]
    ln1_kv = _layernorm(x_kv, g1, b1)
    w_qkv = wqkv_ref[...]                                  # (C, 3*HS), bf16
    if nq == 1:
        # single fused MXU pass for Q, K and V
        qkv = jnp.dot(ln1_kv.astype(cdt), w_qkv, preferred_element_type=f32)
        q_all = qkv[:, :HS]                                # (T, HS)
        k_all = qkv[:, HS:2 * HS]
        v_all = qkv[:, 2 * HS:]
    else:
        # query rows differ from K/V rows when the sequence is tiled
        ln1_q = _layernorm(x_q, g1, b1)
        q_all = jnp.dot(ln1_q.astype(cdt), w_qkv[:, :HS],
                        preferred_element_type=f32)        # (tq, HS)
        kv = jnp.dot(ln1_kv.astype(cdt), w_qkv[:, HS:],
                     preferred_element_type=f32)           # (T, 2*HS)
        k_all = kv[:, :HS]
        v_all = kv[:, HS:]

    # ---- multi-head causal attention: heads batched into one dot_general ----
    qh = jnp.swapaxes(q_all.reshape(tq, nh, hd), 0, 1)     # (nh, tq, hd)
    kh = jnp.swapaxes(k_all.reshape(T, nh, hd), 0, 1)      # (nh, T,  hd)
    vh = jnp.swapaxes(v_all.reshape(T, nh, hd), 0, 1)      # (nh, T,  hd)

    s = jnp.einsum('hqd,hkd->hqk', qh.astype(cdt), kh.astype(cdt),
                   preferred_element_type=f32) * (hd ** -0.5)   # (nh, tq, T)

    rows = q_start + jax.lax.broadcasted_iota(jnp.int32, (tq, T), 0)
    cols = jax.lax.broadcasted_iota(jnp.int32, (tq, T), 1)
    s = jnp.where((rows >= cols)[None, :, :], s, -1e30)    # finite causal mask

    m = jnp.max(s, axis=-1, keepdims=True)
    p = jnp.exp(s - m)
    denom = jnp.sum(p, axis=-1, keepdims=True)
    p = p * pl.reciprocal(denom, approx=True)              # EUP reciprocal
    # dropout on attention weights is identity at eval time

    attn = jnp.einsum('hqk,hkd->hqd', p.astype(cdt), vh.astype(cdt),
                      preferred_element_type=f32)          # (nh, tq, hd)
    att = jnp.swapaxes(attn, 0, 1).reshape(tq, HS)         # (tq, HS)

    proj = jnp.dot(att.astype(cdt), wp_ref[...],
                   preferred_element_type=f32) + bp_ref[0]
    x1 = x_q + proj                                        # residual 1

    # ---- ln2 + feed-forward (ReLU, dropout = identity at eval time) ----
    ln2x = _layernorm(x1, ln2_g_ref[0], ln2_b_ref[0])
    h = jnp.dot(ln2x.astype(cdt), w1_ref[...],
                preferred_element_type=f32) + b1_ref[0]
    h = jnp.maximum(h, 0.0)
    ff = jnp.dot(h.astype(cdt), w2_ref[...],
                 preferred_element_type=f32) + b2_ref[0]

    o_ref[...] = (x1 + ff).astype(o_ref.dtype)             # residual 2


def block_forward(x, params, *, num_heads, q_block=None,
                  compute_dtype=jnp.bfloat16):
    B, T, C = x.shape
    HS = params["wq"].shape[1]
    HID = params["w1"].shape[1]
    assert HS == C, "residual x + MHA(ln1(x)) requires head_size == embedding_dim"
    assert HS % num_heads == 0
    head_dim = HS // num_heads

    # Query-tile size: full sequence when short, otherwise 256-row tiles.
    if q_block is None:
        q_block = T if T <= 256 else 256
    assert T % q_block == 0 and (q_block == T or q_block % 8 == 0)
    nq = T // q_block

    # Fuse Q/K/V into one (C, 3*HS) weight and keep MXU weights in bf16.
    # (In production this fusion/cast would be done once at param-load time.)
    wqkv = jnp.concatenate([params["wq"], params["wk"], params["wv"]],
                           axis=1).astype(compute_dtype)
    wp = params["wp"].astype(compute_dtype)
    w1 = params["w1"].astype(compute_dtype)
    w2 = params["w2"].astype(compute_dtype)

    kernel = functools.partial(
        block_kernel, num_heads=num_heads, head_dim=head_dim, head_size=HS,
        q_block=q_block, seq_len=T, compute_dtype=compute_dtype)
    const2 = lambda b, qi: (0, 0)

    return pl.pallas_call(
        kernel,
        out_shape=jax.ShapeDtypeStruct((B, T, C), x.dtype),
        grid_spec=pltpu.PrefetchScalarGridSpec(
            num_scalar_prefetch=0,
            grid=(B, nq),
            in_specs=[
                pl.BlockSpec((None, q_block, C), lambda b, qi: (b, qi, 0)),  # x (query rows)
                pl.BlockSpec((None, T, C), lambda b, qi: (b, 0, 0)),         # x (full seq, K/V)
                pl.BlockSpec((1, C), const2),         # ln1 gamma
                pl.BlockSpec((1, C), const2),         # ln1 beta
                pl.BlockSpec((C, 3 * HS), const2),    # fused Wqkv (bf16)
                pl.BlockSpec((HS, HS), const2),       # W proj (bf16)
                pl.BlockSpec((1, HS), const2),        # b proj
                pl.BlockSpec((1, HS), const2),        # ln2 gamma
                pl.BlockSpec((1, HS), const2),        # ln2 beta
                pl.BlockSpec((HS, HID), const2),      # FF W1 (bf16)
                pl.BlockSpec((1, HID), const2),       # FF b1
                pl.BlockSpec((HID, HS), const2),      # FF W2 (bf16)
                pl.BlockSpec((1, HS), const2),        # FF b2
            ],
            out_specs=pl.BlockSpec((None, q_block, C), lambda b, qi: (b, qi, 0)),
        ),
        compiler_params=pltpu.CompilerParams(
            dimension_semantics=("parallel", "parallel"),
            vmem_limit_bytes=32 * 1024 * 1024,  # size to real tile footprint for GPT-scale shapes
        ),
    )(x, x, params["ln1_g"], params["ln1_b"], wqkv, wp, params["bp"],
      params["ln2_g"], params["ln2_b"], w1, params["b1"], w2, params["b2"])


def block_reference(x, params, *, num_heads):
    """Pure-JAX f32 reference mirroring the PyTorch forward (eval mode)."""
    B, T, C = x.shape
    HS = params["wq"].shape[1]
    hd = HS // num_heads
    ln1x = _layernorm(x, params["ln1_g"][0], params["ln1_b"][0])
    q = ln1x @ params["wq"]
    k = ln1x @ params["wk"]
    v = ln1x @ params["wv"]
    mask = jnp.tril(jnp.ones((T, T), dtype=bool))
    outs = []
    for h in range(num_heads):
        sl = slice(h * hd, (h + 1) * hd)
        s = jnp.einsum("btd,bsd->bts", q[..., sl], k[..., sl]) * hd ** (-0.5)
        s = jnp.where(mask, s, -jnp.inf)
        p = jax.nn.softmax(s, axis=-1)
        outs.append(jnp.einsum("bts,bsd->btd", p, v[..., sl]))
    att = jnp.concatenate(outs, axis=-1)
    x1 = x + (att @ params["wp"] + params["bp"][0])
    ln2x = _layernorm(x1, params["ln2_g"][0], params["ln2_b"][0])
    ff = jnp.maximum(ln2x @ params["w1"] + params["b1"][0], 0.0) @ params["w2"] + params["b2"][0]
    return x1 + ff


if __name__ == "__main__":
    # Small shapes consistent with the module: head_size == embedding_dim.
    C = 32                      # embedding_dim
    HS = 32                     # head_size (== embedding_dim for the residual)
    num_heads = 4               # head_dim = 8
    HID = 4 * C                 # feed-forward hidden = 4 * embedding_dim
    dropout = 0.1               # eval mode => identity

    key = jax.random.PRNGKey(0)
    ks = jax.random.split(key, 12)
    scale = 0.02
    params = {
        "ln1_g": jnp.ones((1, C), jnp.float32),
        "ln1_b": jnp.zeros((1, C), jnp.float32),
        "wq": scale * jax.random.normal(ks[0], (C, HS), jnp.float32),
        "wk": scale * jax.random.normal(ks[1], (C, HS), jnp.float32),
        "wv": scale * jax.random.normal(ks[2], (C, HS), jnp.float32),
        "wp": scale * jax.random.normal(ks[3], (HS, HS), jnp.float32),
        "bp": scale * jax.random.normal(ks[4], (1, HS), jnp.float32),
        "ln2_g": jnp.ones((1, HS), jnp.float32),
        "ln2_b": jnp.zeros((1, HS), jnp.float32),
        "w1": scale * jax.random.normal(ks[5], (HS, HID), jnp.float32),
        "b1": scale * jax.random.normal(ks[6], (1, HID), jnp.float32),
        "w2": scale * jax.random.normal(ks[7], (HID, HS), jnp.float32),
        "b2": scale * jax.random.normal(ks[8], (1, HS), jnp.float32),
    }

    # Two configs: (1) single query tile -> fully fused QKV path;
    #              (2) sequence tiled over query blocks -> offset causal mask path.
    configs = [
        (2, 8, None),   # B=2, T=8, one query tile
        (2, 16, 8),     # B=2, T=16, two query tiles of 8 rows
    ]
    for B, T, qb in configs:
        x = jax.random.normal(ks[9], (B, T, C), jnp.float32)
        out = jax.block_until_ready(
            block_forward(x, params, num_heads=num_heads, q_block=qb))
        ref = block_reference(x, params, num_heads=num_heads)
        assert out.shape == (B, T, C)
        # bf16 MXU operands vs a pure-f32 reference -> loose-ish tolerance.
        assert jnp.allclose(out, ref, rtol=1e-2, atol=1e-2), \
            f"mismatch vs JAX reference at B={B}, T={T}, q_block={qb}"

    print("KERNEL_OK")
</pallas_src>

<mosaic_0001>
module attributes {stable_mosaic.version = 11 : i64} {
  func.func @block_kernel(%arg0: i32, %arg1: i32, %arg2: memref<1x8x32xf32, #tpu.memory_space<vmem>>, %arg3: memref<1x8x32xf32, #tpu.memory_space<vmem>>, %arg4: memref<1x32xf32, #tpu.memory_space<vmem>>, %arg5: memref<1x32xf32, #tpu.memory_space<vmem>>, %arg6: memref<32x96xbf16, #tpu.memory_space<vmem>>, %arg7: memref<32x32xbf16, #tpu.memory_space<vmem>>, %arg8: memref<1x32xf32, #tpu.memory_space<vmem>>, %arg9: memref<1x32xf32, #tpu.memory_space<vmem>>, %arg10: memref<1x32xf32, #tpu.memory_space<vmem>>, %arg11: memref<32x128xbf16, #tpu.memory_space<vmem>>, %arg12: memref<1x128xf32, #tpu.memory_space<vmem>>, %arg13: memref<128x32xbf16, #tpu.memory_space<vmem>>, %arg14: memref<1x32xf32, #tpu.memory_space<vmem>>, %arg15: memref<1x8x32xf32, #tpu.memory_space<vmem>>) attributes {dimension_semantics = [#tpu.dimension_semantics<parallel>, #tpu.dimension_semantics<parallel>], iteration_bounds = array<i64: 2, 1>, scalar_prefetch = 0 : i64, scratch_operands = 0 : i64, tpu.core_type = #tpu.core_type<tc>, window_params = [{transform_indices = @transform_0, window_bounds = array<i64: 1, 8, 32>}, {transform_indices = @transform_1, window_bounds = array<i64: 1, 8, 32>}, {pipeline_mode = #tpu.pipeline_mode<synchronous>, transform_indices = @transform_2, window_bounds = array<i64: 1, 32>}, {pipeline_mode = #tpu.pipeline_mode<synchronous>, transform_indices = @transform_3, window_bounds = array<i64: 1, 32>}, {pipeline_mode = #tpu.pipeline_mode<synchronous>, transform_indices = @transform_4, window_bounds = array<i64: 32, 96>}, {pipeline_mode = #tpu.pipeline_mode<synchronous>, transform_indices = @transform_5, window_bounds = array<i64: 32, 32>}, {pipeline_mode = #tpu.pipeline_mode<synchronous>, transform_indices = @transform_6, window_bounds = array<i64: 1, 32>}, {pipeline_mode = #tpu.pipeline_mode<synchronous>, transform_indices = @transform_7, window_bounds = array<i64: 1, 32>}, {pipeline_mode = #tpu.pipeline_mode<synchronous>, transform_indices = @transform_8, window_bounds = array<i64: 1, 32>}, {pipeline_mode = #tpu.pipeline_mode<synchronous>, transform_indices = @transform_9, window_bounds = array<i64: 32, 128>}, {pipeline_mode = #tpu.pipeline_mode<synchronous>, transform_indices = @transform_10, window_bounds = array<i64: 1, 128>}, {pipeline_mode = #tpu.pipeline_mode<synchronous>, transform_indices = @transform_11, window_bounds = array<i64: 128, 32>}, {pipeline_mode = #tpu.pipeline_mode<synchronous>, transform_indices = @transform_12, window_bounds = array<i64: 1, 32>}, {transform_indices = @transform_13, window_bounds = array<i64: 1, 8, 32>}]} {
    %c8_i32 = arith.constant 8 : i32
    %0 = arith.muli %arg1, %c8_i32 : i32
    %c0 = arith.constant 0 : index
    %c0_0 = arith.constant 0 : index
    %c0_1 = arith.constant 0 : index
    %1 = vector.load %arg3[%c0, %c0_0, %c0_1] : memref<1x8x32xf32, #tpu.memory_space<vmem>>, vector<1x8x32xf32>
    %2 = vector.shape_cast %1 : vector<1x8x32xf32> to vector<8x32xf32>
    %c0_2 = arith.constant 0 : index
    %c0_3 = arith.constant 0 : index
    %3 = vector.load %arg4[%c0_2, %c0_3] : memref<1x32xf32, #tpu.memory_space<vmem>>, vector<1x32xf32>
    %4 = vector.shape_cast %3 : vector<1x32xf32> to vector<32xf32>
    %c0_4 = arith.constant 0 : index
    %c0_5 = arith.constant 0 : index
    %5 = vector.load %arg5[%c0_4, %c0_5] : memref<1x32xf32, #tpu.memory_space<vmem>>, vector<1x32xf32>
    %6 = vector.shape_cast %5 : vector<1x32xf32> to vector<32xf32>
    %cst = arith.constant dense<0.000000e+00> : vector<8xf32>
    %7 = vector.multi_reduction <add>, %2, %cst [1] : vector<8x32xf32> to vector<8xf32>
    %8 = vector.shape_cast %7 : vector<8xf32> to vector<8x1xf32>
    %cst_6 = arith.constant 3.200000e+01 : f32
    %9 = vector.broadcast %cst_6 : f32 to vector<8x1xf32>
    %10 = arith.divf %8, %9 : vector<8x1xf32>
    %11 = vector.broadcast %10 : vector<8x1xf32> to vector<8x32xf32>
    %12 = arith.subf %2, %11 : vector<8x32xf32>
    %13 = arith.mulf %12, %12 : vector<8x32xf32>
    %cst_7 = arith.constant dense<0.000000e+00> : vector<8xf32>
    %14 = vector.multi_reduction <add>, %13, %cst_7 [1] : vector<8x32xf32> to vector<8xf32>
    %15 = vector.shape_cast %14 : vector<8xf32> to vector<8x1xf32>
    %cst_8 = arith.constant 3.200000e+01 : f32
    %16 = vector.broadcast %cst_8 : f32 to vector<8x1xf32>
    %17 = arith.divf %15, %16 : vector<8x1xf32>
    %18 = vector.broadcast %10 : vector<8x1xf32> to vector<8x32xf32>
    %19 = arith.subf %2, %18 : vector<8x32xf32>
    %cst_9 = arith.constant 9.99999974E-6 : f32
    %20 = vector.broadcast %cst_9 : f32 to vector<8x1xf32>
    %21 = arith.addf %17, %20 : vector<8x1xf32>
    %22 = math.rsqrt %21 : vector<8x1xf32>
    %23 = vector.broadcast %22 : vector<8x1xf32> to vector<8x32xf32>
    %24 = arith.mulf %19, %23 : vector<8x32xf32>
    %25 = vector.shape_cast %4 : vector<32xf32> to vector<1x32xf32>
    %26 = vector.broadcast %25 : vector<1x32xf32> to vector<8x32xf32>
    %27 = arith.mulf %24, %26 : vector<8x32xf32>
    %28 = vector.shape_cast %6 : vector<32xf32> to vector<1x32xf32>
    %29 = vector.broadcast %28 : vector<1x32xf32> to vector<8x32xf32>
    %30 = arith.addf %27, %29 : vector<8x32xf32>
    %c0_10 = arith.constant 0 : index
    %c0_11 = arith.constant 0 : index
    %31 = vector.load %arg6[%c0_10, %c0_11] : memref<32x96xbf16, #tpu.memory_space<vmem>>, vector<32x96xbf16>
    %32 = arith.truncf %30 : vector<8x32xf32> to vector<8x32xbf16>
    %cst_12 = arith.constant dense<0.000000e+00> : vector<8x96xf32>
    %33 = tpu.matmul %32, %31, %cst_12 {dimension_numbers = #tpu.dot_dimension_numbers<[1], [0], [0], [1], [0, 0, 1, 1], [], []>} : vector<8x32xbf16>, vector<32x96xbf16>, vector<8x96xf32> -> vector<8x96xf32>
    %34 = vector.extract_strided_slice %33 {offsets = [0, 0], sizes = [8, 32], strides = [1, 1]} : vector<8x96xf32> to vector<8x32xf32>
    %35 = vector.extract_strided_slice %33 {offsets = [0, 32], sizes = [8, 32], strides = [1, 1]} : vector<8x96xf32> to vector<8x32xf32>
    %36 = vector.extract_strided_slice %33 {offsets = [0, 64], sizes = [8, 32], strides = [1, 1]} : vector<8x96xf32> to vector<8x32xf32>
    %37 = vector.shape_cast %34 : vector<8x32xf32> to vector<8x4x8xf32>
    %38 = tpu.transpose %37, [1, 0, 2] : vector<8x4x8xf32> -> vector<4x8x8xf32>
    %39 = vector.shape_cast %35 : vector<8x32xf32> to vector<8x4x8xf32>
    %40 = tpu.transpose %39, [1, 0, 2] : vector<8x4x8xf32> -> vector<4x8x8xf32>
    %41 = vector.shape_cast %36 : vector<8x32xf32> to vector<8x4x8xf32>
    %42 = tpu.transpose %41, [1, 0, 2] : vector<8x4x8xf32> -> vector<4x8x8xf32>
    %43 = arith.truncf %38 : vector<4x8x8xf32> to vector<4x8x8xbf16>
    %44 = arith.truncf %40 : vector<4x8x8xf32> to vector<4x8x8xbf16>
    "tpu.trace_start"() <{level = 10 : i32, message = "hqd,hkd->hqk"}> : () -> ()
    %cst_13 = arith.constant dense<0.000000e+00> : vector<4x8x8xf32>
    %45 = tpu.matmul %43, %44, %cst_13 {dimension_numbers = #tpu.dot_dimension_numbers<[2], [2], [1], [1], [0, 0, 0, 1, 1, 1], [0], [0]>} : vector<4x8x8xbf16>, vector<4x8x8xbf16>, vector<4x8x8xf32> -> vector<4x8x8xf32>
    "tpu.trace_stop"() : () -> ()
    %cst_14 = arith.constant 0.353553385 : f32
    %46 = vector.broadcast %cst_14 : f32 to vector<4x8x8xf32>
    %47 = arith.mulf %45, %46 : vector<4x8x8xf32>
    %48 = tpu.iota {dimensions = array<i32: 0>} : vector<8x8xi32>
    %49 = vector.broadcast %0 : i32 to vector<8x8xi32>
    %50 = arith.addi %49, %48 : vector<8x8xi32>
    %51 = tpu.iota {dimensions = array<i32: 1>} : vector<8x8xi32>
    %52 = arith.cmpi sge, %50, %51 : vector<8x8xi32>
    %53 = vector.shape_cast %52 : vector<8x8xi1> to vector<1x8x8xi1>
    %cst_15 = arith.constant -1.000000e+30 : f32
    %54 = vector.shape_cast %53 : vector<1x8x8xi1> to vector<1x8x8xi1>
    %55 = vector.broadcast %54 : vector<1x8x8xi1> to vector<4x8x8xi1>
    %56 = vector.broadcast %cst_15 : f32 to vector<4x8x8xf32>
    %57 = arith.select %55, %47, %56 : vector<4x8x8xi1>, vector<4x8x8xf32>
    %cst_16 = arith.constant dense<0xFF800000> : vector<4x8xf32>
    %58 = vector.multi_reduction <maximumf>, %57, %cst_16 [2] : vector<4x8x8xf32> to vector<4x8xf32>
    %59 = vector.shape_cast %58 : vector<4x8xf32> to vector<4x8x1xf32>
    %60 = vector.broadcast %59 : vector<4x8x1xf32> to vector<4x8x8xf32>
    %61 = arith.subf %57, %60 : vector<4x8x8xf32>
    %62 = math.exp %61 : vector<4x8x8xf32>
    %cst_17 = arith.constant dense<0.000000e+00> : vector<4x8xf32>
    %63 = vector.multi_reduction <add>, %62, %cst_17 [2] : vector<4x8x8xf32> to vector<4x8xf32>
    %64 = vector.shape_cast %63 : vector<4x8xf32> to vector<4x8x1xf32>
    %65 = tpu.reciprocal %64 {approx = true} : vector<4x8x1xf32> -> vector<4x8x1xf32>
    %66 = vector.broadcast %65 : vector<4x8x1xf32> to vector<4x8x8xf32>
    %67 = arith.mulf %62, %66 : vector<4x8x8xf32>
    %68 = arith.truncf %67 : vector<4x8x8xf32> to vector<4x8x8xbf16>
    %69 = arith.truncf %42 : vector<4x8x8xf32> to vector<4x8x8xbf16>
    "tpu.trace_start"() <{level = 10 : i32, message = "hqk,hkd->hqd"}> : () -> ()
    %cst_18 = arith.constant dense<0.000000e+00> : vector<4x8x8xf32>
    %70 = tpu.matmul %68, %69, %cst_18 {dimension_numbers = #tpu.dot_dimension_numbers<[2], [1], [1], [2], [0, 0, 0, 1, 1, 2], [0], [0]>} : vector<4x8x8xbf16>, vector<4x8x8xbf16>, vector<4x8x8xf32> -> vector<4x8x8xf32>
    "tpu.trace_stop"() : () -> ()
    %71 = tpu.transpose %70, [1, 0, 2] : vector<4x8x8xf32> -> vector<8x4x8xf32>
    %72 = vector.shape_cast %71 : vector<8x4x8xf32> to vector<8x32xf32>
    %73 = arith.truncf %72 : vector<8x32xf32> to vector<8x32xbf16>
    %c0_19 = arith.constant 0 : index
    %c0_20 = arith.constant 0 : index
    %74 = vector.load %arg7[%c0_19, %c0_20] : memref<32x32xbf16, #tpu.memory_space<vmem>>, vector<32x32xbf16>
    %cst_21 = arith.constant dense<0.000000e+00> : vector<8x32xf32>
    %75 = tpu.matmul %73, %74, %cst_21 {dimension_numbers = #tpu.dot_dimension_numbers<[1], [0], [0], [1], [0, 0, 1, 1], [], []>} : vector<8x32xbf16>, vector<32x32xbf16>, vector<8x32xf32> -> vector<8x32xf32>
    %c0_22 = arith.constant 0 : index
    %c0_23 = arith.constant 0 : index
    %76 = vector.load %arg8[%c0_22, %c0_23] : memref<1x32xf32, #tpu.memory_space<vmem>>, vector<1x32xf32>
    %77 = vector.shape_cast %76 : vector<1x32xf32> to vector<32xf32>
    %78 = vector.shape_cast %77 : vector<32xf32> to vector<1x32xf32>
    %79 = vector.broadcast %78 : vector<1x32xf32> to vector<8x32xf32>
    %80 = arith.addf %75, %79 : vector<8x32xf32>
    %81 = arith.addf %2, %80 : vector<8x32xf32>
    %c0_24 = arith.constant 0 : index
    %c0_25 = arith.constant 0 : index
    %82 = vector.load %arg9[%c0_24, %c0_25] : memref<1x32xf32, #tpu.memory_space<vmem>>, vector<1x32xf32>
    %83 = vector.shape_cast %82 : vector<1x32xf32> to vector<32xf32>
    %c0_26 = arith.constant 0 : index
    %c0_27 = arith.constant 0 : index
    %84 = vector.load %arg10[%c0_26, %c0_27] : memref<1x32xf32, #tpu.memory_space<vmem>>, vector<1x32xf32>
    %85 = vector.shape_cast %84 : vector<1x32xf32> to vector<32xf32>
    %cst_28 = arith.constant dense<0.000000e+00> : vector<8xf32>
    %86 = vector.multi_reduction <add>, %81, %cst_28 [1] : vector<8x32xf32> to vector<8xf32>
    %87 = vector.shape_cast %86 : vector<8xf32> to vector<8x1xf32>
    %cst_29 = arith.constant 3.200000e+01 : f32
    %88 = vector.broadcast %cst_29 : f32 to vector<8x1xf32>
    %89 = arith.divf %87, %88 : vector<8x1xf32>
    %90 = vector.broadcast %89 : vector<8x1xf32> to vector<8x32xf32>
    %91 = arith.subf %81, %90 : vector<8x32xf32>
    %92 = arith.mulf %91, %91 : vector<8x32xf32>
    %cst_30 = arith.constant dense<0.000000e+00> : vector<8xf32>
    %93 = vector.multi_reduction <add>, %92, %cst_30 [1] : vector<8x32xf32> to vector<8xf32>
    %94 = vector.shape_cast %93 : vector<8xf32> to vector<8x1xf32>
    %cst_31 = arith.constant 3.200000e+01 : f32
    %95 = vector.broadcast %cst_31 : f32 to vector<8x1xf32>
    %96 = arith.divf %94, %95 : vector<8x1xf32>
    %97 = vector.broadcast %89 : vector<8x1xf32> to vector<8x32xf32>
    %98 = arith.subf %81, %97 : vector<8x32xf32>
    %cst_32 = arith.constant 9.99999974E-6 : f32
    %99 = vector.broadcast %cst_32 : f32 to vector<8x1xf32>
    %100 = arith.addf %96, %99 : vector<8x1xf32>
    %101 = math.rsqrt %100 : vector<8x1xf32>
    %102 = vector.broadcast %101 : vector<8x1xf32> to vector<8x32xf32>
    %103 = arith.mulf %98, %102 : vector<8x32xf32>
    %104 = vector.shape_cast %83 : vector<32xf32> to vector<1x32xf32>
    %105 = vector.broadcast %104 : vector<1x32xf32> to vector<8x32xf32>
    %106 = arith.mulf %103, %105 : vector<8x32xf32>
    %107 = vector.shape_cast %85 : vector<32xf32> to vector<1x32xf32>
    %108 = vector.broadcast %107 : vector<1x32xf32> to vector<8x32xf32>
    %109 = arith.addf %106, %108 : vector<8x32xf32>
    %110 = arith.truncf %109 : vector<8x32xf32> to vector<8x32xbf16>
    %c0_33 = arith.constant 0 : index
    %c0_34 = arith.constant 0 : index
    %111 = vector.load %arg11[%c0_33, %c0_34] : memref<32x128xbf16, #tpu.memory_space<vmem>>, vector<32x128xbf16>
    %cst_35 = arith.constant dense<0.000000e+00> : vector<8x128xf32>
    %112 = tpu.matmul %110, %111, %cst_35 {dimension_numbers = #tpu.dot_dimension_numbers<[1], [0], [0], [1], [0, 0, 1, 1], [], []>} : vector<8x32xbf16>, vector<32x128xbf16>, vector<8x128xf32> -> vector<8x128xf32>
    %c0_36 = arith.constant 0 : index
    %c0_37 = arith.constant 0 : index
    %113 = vector.load %arg12[%c0_36, %c0_37] : memref<1x128xf32, #tpu.memory_space<vmem>>, vector<1x128xf32>
    %114 = vector.shape_cast %113 : vector<1x128xf32> to vector<128xf32>
    %115 = vector.shape_cast %114 : vector<128xf32> to vector<1x128xf32>
    %116 = vector.broadcast %115 : vector<1x128xf32> to vector<8x128xf32>
    %117 = arith.addf %112, %116 : vector<8x128xf32>
    %cst_38 = arith.constant 0.000000e+00 : f32
    %118 = vector.broadcast %cst_38 : f32 to vector<8x128xf32>
    %119 = arith.maximumf %117, %118 : vector<8x128xf32>
    %120 = arith.truncf %119 : vector<8x128xf32> to vector<8x128xbf16>
    %c0_39 = arith.constant 0 : index
    %c0_40 = arith.constant 0 : index
    %121 = vector.load %arg13[%c0_39, %c0_40] : memref<128x32xbf16, #tpu.memory_space<vmem>>, vector<128x32xbf16>
    %cst_41 = arith.constant dense<0.000000e+00> : vector<8x32xf32>
    %122 = tpu.matmul %120, %121, %cst_41 {dimension_numbers = #tpu.dot_dimension_numbers<[1], [0], [0], [1], [0, 0, 1, 1], [], []>} : vector<8x128xbf16>, vector<128x32xbf16>, vector<8x32xf32> -> vector<8x32xf32>
    %c0_42 = arith.constant 0 : index
    %c0_43 = arith.constant 0 : index
    %123 = vector.load %arg14[%c0_42, %c0_43] : memref<1x32xf32, #tpu.memory_space<vmem>>, vector<1x32xf32>
    %124 = vector.shape_cast %123 : vector<1x32xf32> to vector<32xf32>
    %125 = vector.shape_cast %124 : vector<32xf32> to vector<1x32xf32>
    %126 = vector.broadcast %125 : vector<1x32xf32> to vector<8x32xf32>
    %127 = arith.addf %122, %126 : vector<8x32xf32>
    %128 = arith.addf %81, %127 : vector<8x32xf32>
    %c0_44 = arith.constant 0 : index
    %c0_45 = arith.constant 0 : index
    %c0_46 = arith.constant 0 : index
    %129 = vector.load %arg15[%c0_44, %c0_45, %c0_46] : memref<1x8x32xf32, #tpu.memory_space<vmem>>, vector<1x8x32xf32>
    %130 = vector.shape_cast %129 : vector<1x8x32xf32> to vector<8x32xf32>
    %131 = vector.shape_cast %128 : vector<8x32xf32> to vector<1x8x32xf32>
    tpu.vector_store %arg15[%c0_44, %c0_45, %c0_46], %131 {strides = array<i32>} : memref<1x8x32xf32, #tpu.memory_space<vmem>>, vector<1x8x32xf32>,
    return
  }
  func.func @transform_0(%arg0: i32, %arg1: i32) -> (i32, i32, i32) {
    %c0_i32 = arith.constant 0 : i32
    %c0_i32_0 = arith.constant 0 : i32
    return %arg0, %arg1, %c0_i32 : i32, i32, i32
  }
  func.func @transform_1(%arg0: i32, %arg1: i32) -> (i32, i32, i32) {
    %c0_i32 = arith.constant 0 : i32
    %c0_i32_0 = arith.constant 0 : i32
    %c0_i32_1 = arith.constant 0 : i32
    return %arg0, %c0_i32, %c0_i32_0 : i32, i32, i32
  }
  func.func @transform_2(%arg0: i32, %arg1: i32) -> (i32, i32) {
    %c0_i32 = arith.constant 0 : i32
    %c0_i32_0 = arith.constant 0 : i32
    %c0_i32_1 = arith.constant 0 : i32
    return %c0_i32, %c0_i32_0 : i32, i32
  }
  func.func @transform_3(%arg0: i32, %arg1: i32) -> (i32, i32) {
    %c0_i32 = arith.constant 0 : i32
    %c0_i32_0 = arith.constant 0 : i32
    %c0_i32_1 = arith.constant 0 : i32
    return %c0_i32, %c0_i32_0 : i32, i32
  }
  func.func @transform_4(%arg0: i32, %arg1: i32) -> (i32, i32) {
    %c0_i32 = arith.constant 0 : i32
    %c0_i32_0 = arith.constant 0 : i32
    %c0_i32_1 = arith.constant 0 : i32
    return %c0_i32, %c0_i32_0 : i32, i32
  }
  func.func @transform_5(%arg0: i32, %arg1: i32) -> (i32, i32) {
    %c0_i32 = arith.constant 0 : i32
    %c0_i32_0 = arith.constant 0 : i32
    %c0_i32_1 = arith.constant 0 : i32
    return %c0_i32, %c0_i32_0 : i32, i32
  }
  func.func @transform_6(%arg0: i32, %arg1: i32) -> (i32, i32) {
    %c0_i32 = arith.constant 0 : i32
    %c0_i32_0 = arith.constant 0 : i32
    %c0_i32_1 = arith.constant 0 : i32
    return %c0_i32, %c0_i32_0 : i32, i32
  }
  func.func @transform_7(%arg0: i32, %arg1: i32) -> (i32, i32) {
    %c0_i32 = arith.constant 0 : i32
    %c0_i32_0 = arith.constant 0 : i32
    %c0_i32_1 = arith.constant 0 : i32
    return %c0_i32, %c0_i32_0 : i32, i32
  }
  func.func @transform_8(%arg0: i32, %arg1: i32) -> (i32, i32) {
    %c0_i32 = arith.constant 0 : i32
    %c0_i32_0 = arith.constant 0 : i32
    %c0_i32_1 = arith.constant 0 : i32
    return %c0_i32, %c0_i32_0 : i32, i32
  }
  func.func @transform_9(%arg0: i32, %arg1: i32) -> (i32, i32) {
    %c0_i32 = arith.constant 0 : i32
    %c0_i32_0 = arith.constant 0 : i32
    %c0_i32_1 = arith.constant 0 : i32
    return %c0_i32, %c0_i32_0 : i32, i32
  }
  func.func @transform_10(%arg0: i32, %arg1: i32) -> (i32, i32) {
    %c0_i32 = arith.constant 0 : i32
    %c0_i32_0 = arith.constant 0 : i32
    %c0_i32_1 = arith.constant 0 : i32
    return %c0_i32, %c0_i32_0 : i32, i32
  }
  func.func @transform_11(%arg0: i32, %arg1: i32) -> (i32, i32) {
    %c0_i32 = arith.constant 0 : i32
    %c0_i32_0 = arith.constant 0 : i32
    %c0_i32_1 = arith.constant 0 : i32
    return %c0_i32, %c0_i32_0 : i32, i32
  }
  func.func @transform_12(%arg0: i32, %arg1: i32) -> (i32, i32) {
    %c0_i32 = arith.constant 0 : i32
    %c0_i32_0 = arith.constant 0 : i32
    %c0_i32_1 = arith.constant 0 : i32
    return %c0_i32, %c0_i32_0 : i32, i32
  }
  func.func @transform_13(%arg0: i32, %arg1: i32) -> (i32, i32, i32) {
    %c0_i32 = arith.constant 0 : i32
    %c0_i32_0 = arith.constant 0 : i32
    return %arg0, %arg1, %c0_i32 : i32, i32, i32
  }
}

</mosaic_0001>

<bundles_post_ra>
// kernel: tpu_custom_call.1
= control target key start
LH: loop header
LB: loop body
LE: loop exit
PB: predicated region body
PF: predicated region fallthrough
CT: control target
= control target key end

     0   :  { %s2822_s0 = inlined_call_operand.vmem [shape: f32[2,8,32], index: 0, kind: input, shape index: {}]   ;;  %s2823_s1 = inlined_call_operand.vmem [shape: f32[2,8,32], index: 1, kind: input, shape index: {}]   ;;  %s2824_s2 = inlined_call_operand.vmem [shape: f32[1,32], index: 2, kind: input, shape index: {}]   ;;  %s2825_s3 = inlined_call_operand.vmem [shape: f32[1,32], index: 3, kind: input, shape index: {}]   ;;  %s2826_s4 = inlined_call_operand.vmem [shape: bf16[32,96], index: 4, kind: input, shape index: {}]   ;;  %s2827_s5 = inlined_call_operand.vmem [shape: bf16[32,32], index: 5, kind: input, shape index: {}]   ;;  %s2828_s6 = inlined_call_operand.vmem [shape: f32[1,32], index: 6, kind: input, shape index: {}]   ;;  %s2829_s7 = inlined_call_operand.vmem [shape: f32[1,32], index: 7, kind: input, shape index: {}]   ;;  %s2830_s8 = inlined_call_operand.vmem [shape: f32[1,32], index: 8, kind: input, shape index: {}]   ;;  %s2831_s9 = inlined_call_operand.vmem [shape: bf16[32,128], index: 9, kind: input, shape index: {}]   ;;  %s2832_s10 = inlined_call_operand.vmem [shape: f32[1,128], index: 10, kind: input, shape index: {}]   ;;  %s2833_s11 = inlined_call_operand.vmem [shape: bf16[128,32], index: 11, kind: input, shape index: {}]   ;;  %s2834_s12 = inlined_call_operand.vmem [shape: f32[1,32], index: 12, kind: input, shape index: {}]   ;;  %s2835_s13 = inlined_call_operand.hbm [shape: f32[2,8,32], index: 13, kind: output, shape index: {}]  }
   0x1   :  { %2836 = sst [smem:[#allocation5_spill]] %s2823_s1 }
   0x2   :  { %2837 = sst [smem:[#allocation6_spill]] %s2824_s2 }
   0x3   :  { %2838 = sst [smem:[#allocation7_spill]] %s2825_s3 }
   0x4   :  { %18 = vsyncpa [#allocation3], 0 }
   0x5   :  { %20 = vsyncpa [#allocation3 + $0x1], 0  ;;  %s2432_s24 = smov 0   ;;  %s2434_s25 = smov 0  }
   0x6   :  { %s2436_s26 = smov 0   ;;  %s2438_s27 = smov 0  }
   0x7   :  { %s2440_s28 = smov 0   ;;  %s2442_s0 = smov 0  }
   0x8 LB: > { %s1991_s29 = sadd.s32 4294967295, %s2347_s0   ;;  %s1992_s30 = sadd.s32 4294967294, %s2347_s0   ;;  %s2347_s0 = sphi %s2442_s0, %s26_s0   ;;  %s2343_s28 = sphi %s2440_s28, %s2848_s28   ;;  %s2339_s27 = sphi %s2438_s27, %s2847_s27   ;;  %s2335_s26 = sphi %s2436_s26, %s2846_s26   ;;  %s2331_s25 = sphi %s2434_s25, %s2845_s25   ;;  %s2327_s24 = sphi %s2432_s24, %s2844_s24  }
   0x9   : > { %s38_s14 = sadd.s32 1, %s2343_s28  ;;  %s332_s15 = sadd.s32 1, %s2335_s26 }
   0xa   : > { %p40_p0 = scmp.ge.s32.totalorder %s38_s14, 2  ;;  %p342_p1 = scmp.ne.s32.totalorder %s2335_s26, %s2331_s25 }
   0xb   : > { %p343_p2 = scmp.eq.s32.totalorder %s1991_s29, 1  ;;  %p348_p3 = scmp.ne.s32.totalorder %s2331_s25, %s2327_s24 }
   0xc   : > { %s2850_s14 = smov (%p40_p0, %s38_s14), 0  ;;  %p349_p5 = scmp.eq.s32.totalorder %s1992_s30, 1 }
   0xd   : > { %p2472_p4 = por %p343_p2, %p342_p1  ;;  %s327_s17 = ssub.s32 %s2343_s28, %s2850_s14 }
   0xe   : > { %p1995_p6 = scmp.ge.s32.totalorder %s2347_s0, 1  ;;  %p330_p7 = scmp.eq.s32.totalorder %s327_s17, 0 }
   0xf   : > { %p2479_p8 = por %p349_p5, %p348_p3  ;;  %p417_p9 = scmp.lt.s32.totalorder %s2347_s0, 3 }
  0x10   : > { %s2485_s19 = scalar_select %p330_p7, %s2335_s26, %s332_s15  }
  0x11   : > { %p418_p10 = pnand %p1995_p6, %p417_p9 }
  0x12   : > { %p474_p11 = scmp.lt.s32.totalorder (!%p418_p10), %s2339_s27, 1  ;;  %vm483_vm0 = vcmask (!%p418_p10), 261120   ;;  %s2841_s1 = sld [smem:[#allocation5_spill]] (!%p418_p10)  ;;  %v2235_v7 = vld [vmem:[%s2826_s4] sm:$0xff] (!%p418_p10)   ;;  %v2349_v8 = vmov (!%p418_p10), 0.0   ;;  %vm2350_vm1 = vmmov (!%p418_p10), 0   ;;  %v587_v29 = vlaneseq (!%p418_p10) }
  0x13   : > { %421 = sbr.rel (%p418_p10) target bundleno = 2747 (0xabb), region = 72  ;;  %2076 = vmatprep.subr.bf16.mxu0 (!%p418_p10), %v2349_v8  ;;  %2080 = vmatprep.mubr.msk.bf16.mxu0 (!%p418_p10), %vm2350_vm1, %v2349_v8  ;;  %v2236_v9 = vld [vmem:[%s2826_s4 + $0x8] sm:$0xff] (!%p418_p10)   ;;  %s2842_s2 = sld [smem:[#allocation6_spill]] (!%p418_p10)  ;;  %v2355_v27 = vmov (!%p418_p10), 1983009808   ;;  %vm1022_vm2 = vcmask (!%p418_p10), 64512  }
  0x14   : > { %2077 = vmatpush3.bf16.msra.mxu0 (!%p418_p10), %v2235_v7  ;;  %2096 = vmatprep.subr.bf16.mxu1 (!%p418_p10), %v2349_v8  ;;  %s2843_s3 = sld [smem:[#allocation7_spill]] (!%p418_p10)  ;;  %s2351_s30 = smov (!%p418_p10), 104   ;;  %v585_v28 = vunpack.c.l.s4 (!%p418_p10), %v2355_v27  ;;  %v2537_v31 = vshrl.u32 (!%p418_p10), %v587_v29, 7  ;;  %v2356_v33 = vmov (!%p418_p10), 1934713408   ;;  %vm1279_vm4 = vcmask (!%p418_p10), 1043456  }
  0x15   : > { %2078 = vmatprep.subr.bf16.mxu0 (!%p418_p10), %v2349_v8  ;;  %2098 = vmatprep.mubr.msk.bf16.mxu1 (!%p418_p10), %vm2350_vm1, %v2349_v8  ;;  %s2352_s15 = smov (!%p418_p10), 120   ;;  %s2353_s17 = smov (!%p418_p10), 112   ;;  %v617_v34 = vunpack.c.l.s4 (!%p418_p10), %v2356_v33  ;;  %vm1610_vm5 = vcmask (!%p418_p10), 130048   ;;  %vm1612_vm6 = vcmask (!%p418_p10), 195584  }
  0x16   : > { %v586_v30 = vunpack.c.0.s8 (!%p418_p10), %v585_v28 }
  0x17   : > { %v618_v41 = vunpack.c.0.s8 (!%p418_p10), %v617_v34 }
  0x18   : > { %2079 = vmatpush3.bf16.msra.mxu0 (!%p418_p10), %v2236_v9  ;;  %v2544_v37 = vsub.s32 (!%p418_p10), %v586_v30, %v2537_v31 }
  0x19   : > { %2084 = vmatprep.subr.bf16.mxu0 (!%p418_p10), %v2349_v8  ;;  %v1998_v14 = vld [vmem:[%s2842_s2] ss:$0 sm:$0xff] (!%p418_p10)  ;;  %v2555_v47 = vsub.s32 (!%p418_p10), %v618_v41, %v2537_v31 }
  0x1a   : > { %s475_s20 = scalar_select %p474_p11, %s2339_s27, 1  ;;  %v1999_v16 = vld [vmem:[%s2843_s3] ss:$0 sm:$0xff] }
  0x1c   : > { %s1997_s21 = sshll.u32 %s475_s20, 3  ;;  %s2354_s20 = smov 96  }
  0x1d   : > { %s477_s29 = scalar_lea.vmem %s2841_s1, %s1997_s21  ;;  %s2357_s21 = smov 64  }
  0x1e   : > { %v2492_v0 = vld [vmem:[%s477_s29] sm:$0xff] }
  0x1f   : > { %v484_v1 = vsel %vm483_vm0, %v2492_v0, 0.0 }
  0x20   : > { %485 = vadd.xlane.f32.xlu0 %v484_v1 }
  0xad   : > { %v486_v2 = vpop.xlane.xlu0 %485 }
  0xae   : > { %v488_v3 = vmul.f32 0.03125, %v486_v2 }
  0xb0   : > { %v489_v4 = vsub.f32 %v2492_v0, %v488_v3 }
  0xb2   : > { %v490_v5 = vmul.f32 %v489_v4, %v489_v4 }
  0xb4   : > { %v491_v6 = vsel %vm483_vm0, %v490_v5, 0.0 }
  0xb5   : > { %492 = vadd.xlane.f32.xlu0 %v491_v6 }
 0x142   : > { %v493_v10 = vpop.xlane.xlu0 %492 }
 0x143   : > { %v494_v11 = vmul.f32 0.03125, %v493_v10 }
 0x145   : > { %v495_v12 = vadd.f32 1e-05, %v494_v11 }
 0x147   : > { %2249 = vrsqrt.f32 %v495_v12 }
 0x151   : > { %v2250_v13 = vpop.eup %2249 }
 0x152   : > { %v497_v15 = vmul.f32 %v2250_v13, %v489_v4 }
 0x154   : > { %v504_v17 = vmul.f32 %v1998_v14, %v497_v15 }
 0x156   : > { %v511_v18 = vadd.f32 %v1999_v16, %v504_v17 }
 0x158   : > { %v516_v19 = vpack.c.bf16 %v511_v18, %v511_v18 }
 0x15a   : > { %2081 = vmatmul.mubr.msk.bf16.vlgmr.msra.gmra.mrb[0].mxu0 %vm483_vm0, %v516_v19 }
 0x15b   : > { %2086 = vmatprep.mubr.msk.bf16.mxu0 %vm2350_vm1, %v2349_v8 }
 0x22d   : > { %v2521_v20 = vpop.f32.mrb[0].mxu0 }
 0x22e   : > { %579 = vrot.lane.b32.xlu0 %v2521_v20, %s2351_s30  ;;  %573 = vrot.lane.b32.xlu1 %v2521_v20, %s2352_s15  ;;  %v2082_v21 = vpop.f32.mrb[1].mxu0  ;;  %s2358_s15 = smov 16   ;;  %s464_s30 = sand.u32 1, %s2331_s25  }
 0x22f   : > { %v569_v22 = vpop.f32.mrb[2].mxu0 }
 0x230   : > { %v2083_v23 = vpop.f32.mrb[3].mxu0 }
 0x232   : > { %576 = vrot.lane.b32.xlu1 %v2521_v20, %s2353_s17  ;;  %s2359_s17 = smov 8  }
 0x236   : > { %718 = vrot.lane.b32.xlu1 %v2521_v20, %s2354_s20 }
 0x2a0   : > { %v2527_v24 = vpop.permute.xlu1 %573  ;;  %v2533_v26 = vpop.permute.xlu0 %579 }
 0x2a1   : > { %720 = vrot.lane.b32.xlu1 %v2527_v24, %s2354_s20  ;;  %v598_v38 = vcombine.low %v2527_v24, %v2533_v26  ;;  %v599_v39 = vcombine.high %v2527_v24, %v2533_v26 }
 0x2a3   : > { %v606_v44 = vrot.slane %v598_v38, %v2544_v37  ;;  %v613_v45 = vrot.slane %v599_v39, %v2544_v37 }
 0x2a4   : > { %v2530_v25 = vpop.permute.xlu1 %576 }
 0x2a5   : > { %722 = vrot.lane.b32.xlu1 %v2530_v25, %s2354_s20  ;;  %v582_v35 = vcombine.low %v2521_v20, %v2530_v25  ;;  %v583_v36 = vcombine.high %v2521_v20, %v2530_v25 }
 0x2a7   : > { %v590_v42 = vrot.slane %v582_v35, %v2544_v37  ;;  %v597_v43 = vrot.slane %v583_v36, %v2544_v37 }
 0x2a8   : > { %v719_v32 = vpop.permute.xlu1 %718 }
 0x2a9   : > { %724 = vrot.lane.b32.xlu1 %v2533_v26, %s2354_s20  ;;  %v614_v48 = vcombine.low %v590_v42, %v606_v44  ;;  %v615_v49 = vcombine.high %v590_v42, %v606_v44  ;;  %v630_v50 = vcombine.low %v597_v43, %v613_v45  ;;  %v631_v51 = vcombine.high %v597_v43, %v613_v45  ;;  %s2360_s20 = smov 24  }
 0x2ab   : > { %v622_v57 = vrot.slane %v614_v48, %v2555_v47  ;;  %v629_v58 = vrot.slane %v615_v49, %v2555_v47  ;;  %v638_v59 = vrot.slane %v630_v50, %v2555_v47  ;;  %v645_v60 = vrot.slane %v631_v51, %v2555_v47 }
 0x2ad   : > { %v650_v6 = vcombine.low %v622_v57, %v629_v58  ;;  %v2003_v7 = vcombine.high %v622_v57, %v629_v58  ;;  %v666_v9 = vcombine.low %v638_v59, %v645_v60  ;;  %v2004_v10 = vcombine.high %v638_v59, %v645_v60 }
 0x2af   : > { %v657_v19 = vrot.slane %v650_v6, %v2544_v37  ;;  %v665_v21 = vrot.slane %v2003_v7, %v2544_v37  ;;  %v673_v22 = vrot.slane %v666_v9, %v2544_v37  ;;  %v681_v23 = vrot.slane %v2004_v10, %v2544_v37 }
 0x2b0   : > { %v1216_v9 = vand.u32 127, %v587_v29 }
 0x2b1   : > { %v682_v38 = vcombine.low %v657_v19, %v665_v21  ;;  %v698_v39 = vcombine.low %v673_v22, %v681_v23  ;;  %v699_v41 = vcombine.high %v673_v22, %v681_v23 }
 0x2b2   : > { %vm1217_vm3 = vcmp.ge.s32.totalorder %v2537_v31, %v1216_v9 }
 0x2b3   : > { %v690_v49 = vrot.slane %v682_v38, %v2555_v47  ;;  %v706_v50 = vrot.slane %v698_v39, %v2555_v47 }
 0x2b5   : > { %v714_v58 = vcombine.low %v690_v49, %v706_v50 }
 0x313   : > { %v721_v40 = vpop.permute.xlu1 %720 }
 0x317   : > { %v723_v46 = vpop.permute.xlu1 %722 }
 0x318   : > { %v730_v52 = vcombine.low %v719_v32, %v723_v46  ;;  %v731_v53 = vcombine.high %v719_v32, %v723_v46 }
 0x31a   : > { %v738_v61 = vrot.slane %v730_v52, %v2544_v37  ;;  %v745_v62 = vrot.slane %v731_v53, %v2544_v37 }
 0x31b   : > { %v725_v54 = vpop.permute.xlu1 %724 }
 0x31c   : > { %v746_v55 = vcombine.low %v721_v40, %v725_v54  ;;  %v747_v56 = vcombine.high %v721_v40, %v725_v54  ;;  %v683_v40 = vcombine.high %v657_v19, %v665_v21  ;;  %v713_v54 = vrot.slane %v699_v41, %v2555_v47 }
 0x31e   : > { %v754_v63 = vrot.slane %v746_v55, %v2544_v37  ;;  %v761_v1 = vrot.slane %v747_v56, %v2544_v37  ;;  %v697_v53 = vrot.slane %v683_v40, %v2555_v47 }
 0x320   : > { %v762_v2 = vcombine.low %v738_v61, %v754_v63  ;;  %v763_v3 = vcombine.high %v738_v61, %v754_v63  ;;  %v778_v4 = vcombine.low %v745_v62, %v761_v1  ;;  %v779_v5 = vcombine.high %v745_v62, %v761_v1 }
 0x321   : > { %v716_v59 = vcombine.low %v697_v53, %v713_v54  ;;  %v1014_v61 = vpack.c.bf16 %v714_v58, %v714_v58  ;;  %v717_v6 = vcombine.high %v697_v53, %v713_v54 }
 0x322   : > { %v770_v11 = vrot.slane %v762_v2, %v2555_v47  ;;  %v777_v12 = vrot.slane %v763_v3, %v2555_v47  ;;  %v786_v13 = vrot.slane %v778_v4, %v2555_v47  ;;  %v793_v14 = vrot.slane %v779_v5, %v2555_v47 }
 0x323   : > { %v1016_v62 = vpack.c.bf16 %v716_v59, %v716_v59  ;;  %v715_v2 = vcombine.high %v690_v49, %v706_v50  ;;  %v1017_v7 = vpack.c.bf16 %v717_v6, %v717_v6 }
 0x324   : > { %v798_v15 = vcombine.low %v770_v11, %v777_v12  ;;  %v2005_v16 = vcombine.high %v770_v11, %v777_v12  ;;  %v814_v17 = vcombine.low %v786_v13, %v793_v14  ;;  %v2006_v18 = vcombine.high %v786_v13, %v793_v14 }
 0x325   : > { %v1015_v4 = vpack.c.bf16 %v715_v2, %v715_v2 }
 0x326   : > { %v805_v27 = vrot.slane %v798_v15, %v2544_v37  ;;  %v813_v28 = vrot.slane %v2005_v16, %v2544_v37  ;;  %v821_v30 = vrot.slane %v814_v17, %v2544_v37  ;;  %v829_v32 = vrot.slane %v2006_v18, %v2544_v37 }
 0x328   : > { %v830_v33 = vcombine.low %v805_v27, %v813_v28  ;;  %v846_v34 = vcombine.low %v821_v30, %v829_v32  ;;  %v831_v35 = vcombine.high %v805_v27, %v813_v28  ;;  %v847_v36 = vcombine.high %v821_v30, %v829_v32 }
 0x32a   : > { %v838_v42 = vrot.slane %v830_v33, %v2555_v47  ;;  %v854_v43 = vrot.slane %v846_v34, %v2555_v47  ;;  %v845_v44 = vrot.slane %v831_v35, %v2555_v47  ;;  %v861_v45 = vrot.slane %v847_v36, %v2555_v47 }
 0x32c   : > { %v862_v46 = vcombine.low %v838_v42, %v854_v43  ;;  %v864_v48 = vcombine.low %v845_v44, %v861_v45  ;;  %v863_v57 = vcombine.high %v838_v42, %v854_v43  ;;  %v865_v1 = vcombine.high %v845_v44, %v861_v45 }
 0x32e   : > { %v1018_v51 = vpack.c.bf16 %v862_v46, %v862_v46  ;;  %v1020_v52 = vpack.c.bf16 %v864_v48, %v864_v48  ;;  %v1019_v60 = vpack.c.bf16 %v863_v57, %v863_v57  ;;  %v1021_v3 = vpack.c.bf16 %v865_v1, %v865_v1 }
 0x330   : > { %v1027_v55 = vsel %vm1022_vm2, %v1018_v51, 0  ;;  %v1119_v56 = vsel %vm1022_vm2, %v1020_v52, 0  ;;  %v1073_v63 = vsel %vm1022_vm2, %v1019_v60, 0  ;;  %v1165_v5 = vsel %vm1022_vm2, %v1021_v3, 0 }
 0x331   : > { %2085 = vmatpush3.bf16.xpose.msra.mxu0 %v1027_v55  ;;  %2097 = vmatpush3.bf16.xpose.msra.mxu1 %v1119_v56 }
 0x332   : > { %2090 = vmatprep.subr.bf16.mxu0 %v2349_v8  ;;  %2108 = vmatprep.subr.bf16.mxu1 %v2349_v8 }
 0x338   : > { %2087 = vmatmul.mubr.msk.bf16.vlgmr.msra.gmra.mrb[4].mxu0 %vm1022_vm2, %v1014_v61  ;;  %2099 = vmatmul.mubr.msk.bf16.vlgmr.msra.gmra.mrb[0].mxu1 %vm1022_vm2, %v1016_v62 }
 0x339   : > { %2091 = vmatpush3.bf16.xpose.msra.mxu0 %v1073_v63  ;;  %2092 = vmatprep.mubr.msk.bf16.mxu0 %vm2350_vm1, %v2349_v8 }
 0x33a   : > { %2102 = vmatprep.subr.bf16.mxu0 %v2349_v8  ;;  %2110 = vmatprep.mubr.msk.bf16.mxu1 %vm2350_vm1, %v2349_v8 }
 0x340   : > { %2093 = vmatmul.mubr.msk.bf16.vlgmr.msra.gmra.mrb[8].mxu0 %vm1022_vm2, %v1015_v4 }
 0x341   : > { %2103 = vmatpush3.bf16.xpose.msra.mxu0 %v1165_v5  ;;  %2104 = vmatprep.mubr.msk.bf16.mxu0 %vm2350_vm1, %v2349_v8 }
 0x342   : > { %2114 = vmatprep.subr.bf16.mxu0 %v2349_v8 }
 0x348   : > { %2105 = vmatmul.mubr.msk.bf16.vlgmr.msra.gmra.mrb[12].mxu0 %vm1022_vm2, %v1017_v7 }
 0x349   : > { %2116 = vmatprep.mubr.msk.bf16.mxu0 %vm2350_vm1, %v2349_v8 }
 0x40b   : > { %v1063_v10 = vpop.f32.mrb[4].mxu0  ;;  %v1155_v11 = vpop.f32.mrb[0].mxu1 }
 0x40c   : > { %v1207_v12 = vmul.f32 0.35355338, %v1063_v10  ;;  %v1209_v13 = vmul.f32 0.35355338, %v1155_v11  ;;  %v2088_v14 = vpop.f32.mrb[5].mxu0  ;;  %v2100_v15 = vpop.f32.mrb[1].mxu1 }
 0x40d   : > { %v1066_v16 = vpop.f32.mrb[6].mxu0  ;;  %v1158_v17 = vpop.f32.mrb[2].mxu1 }
 0x40e   : > { %v2089_v18 = vpop.f32.mrb[7].mxu0  ;;  %v2101_v19 = vpop.f32.mrb[3].mxu1  ;;  %v1220_v21 = vsel %vm1217_vm3, %v1207_v12, -1e+30  ;;  %v1222_v29 = vsel %vm1217_vm3, %v1209_v13, -1e+30 }
 0x40f   : > { %v1224_v22 = vsel %vm1022_vm2, %v1220_v21, -inf  ;;  %v1230_v27 = vsel %vm1022_vm2, %v1222_v29, -inf }
 0x410   : > { %1225 = vmax.xlane.f32.xlu1 %v1224_v22 }
 0x413   : > { %v1109_v23 = vpop.f32.mrb[8].mxu0 }
 0x414   : > { %v1208_v28 = vmul.f32 0.35355338, %v1109_v23  ;;  %1231 = vmax.xlane.f32.xlu1 %v1230_v27  ;;  %v2094_v30 = vpop.f32.mrb[9].mxu0 }
 0x415   : > { %v1112_v32 = vpop.f32.mrb[10].mxu0 }
 0x416   : > { %v2095_v33 = vpop.f32.mrb[11].mxu0  ;;  %v1221_v34 = vsel %vm1217_vm3, %v1208_v28, -1e+30 }
 0x417   : > { %v1227_v35 = vsel %vm1022_vm2, %v1221_v34, -inf }
 0x418   : > { %1228 = vmax.xlane.f32.xlu0 %v1227_v35 }
 0x41b   : > { %v1201_v36 = vpop.f32.mrb[12].mxu0 }
 0x41c   : > { %v1210_v38 = vmul.f32 0.35355338, %v1201_v36  ;;  %v2106_v39 = vpop.f32.mrb[13].mxu0 }
 0x41d   : > { %v1204_v40 = vpop.f32.mrb[14].mxu0 }
 0x41e   : > { %v2107_v41 = vpop.f32.mrb[15].mxu0  ;;  %v1223_v42 = vsel %vm1217_vm3, %v1210_v38, -1e+30 }
 0x41f   : > { %v1233_v43 = vsel %vm1022_vm2, %v1223_v42, -inf }
 0x420   : > { %1234 = vmax.xlane.f32.xlu0 %v1233_v43 }
 0x425   : > { %866 = vrot.lane.b32.xlu1 %v2521_v20, %s2357_s21 }
 0x49d   : > { %v1226_v44 = vpop.xlane.xlu1 %1225 }
 0x49e   : > { %v1236_v45 = vsub.f32 %v1220_v21, %v1226_v44 }
 0x4a0   : > { %v1240_v46 = vmul.f32 1.442695, %v1236_v45 }
 0x4a1   : > { %v1232_v55 = vpop.xlane.xlu1 %1231 }
 0x4a2   : > { %2251 = vpow2.f32 %v1240_v46  ;;  %v1238_v56 = vsub.f32 %v1222_v29, %v1232_v55 }
 0x4a4   : > { %v1244_v58 = vmul.f32 1.442695, %v1238_v56 }
 0x4a5   : > { %v1229_v48 = vpop.xlane.xlu0 %1228 }
 0x4a6   : > { %v1237_v49 = vsub.f32 %v1221_v34, %v1229_v48 }
 0x4a8   : > { %v1242_v50 = vmul.f32 1.442695, %v1237_v49 }
 0x4aa   : > { %2253 = vpow2.f32 %v1242_v50 }
 0x4ac   : > { %v2620_v51 = vpop.eup %2251 }
 0x4ad   : > { %v1248_v31 = vsel %vm1022_vm2, %v2620_v51, 0.0  ;;  %v1235_v20 = vpop.xlane.xlu0 %1234 }
 0x4ae   : > { %1249 = vadd.xlane.f32.xlu1 %v1248_v31  ;;  %v1239_v54 = vsub.f32 %v1223_v42, %v1235_v20 }
 0x4b0   : > { %v1246_v57 = vmul.f32 1.442695, %v1239_v54 }
 0x4b2   : > { %2255 = vpow2.f32 %v1246_v57 }
 0x4b3   : > { %2257 = vpow2.f32 %v1244_v58 }
 0x4b4   : > { %v2624_v52 = vpop.eup %2253 }
 0x4b5   : > { %v1251_v53 = vsel %vm1022_vm2, %v2624_v52, 0.0 }
 0x4b6   : > { %1252 = vadd.xlane.f32.xlu0 %v1251_v53 }
 0x4bc   : > { %v2631_v59 = vpop.eup %2255 }
 0x4bd   : > { %v1257_v60 = vsel %vm1022_vm2, %v2631_v59, 0.0  ;;  %v2635_v61 = vpop.eup %2257 }
 0x4bf   : > { %870 = vrot.lane.b32.xlu1 %v2530_v25, %s2357_s21  ;;  %v1254_v25 = vsel %vm1022_vm2, %v2635_v61, 0.0 }
 0x4c3   : > { %872 = vrot.lane.b32.xlu1 %v2533_v26, %s2357_s21 }
 0x4cc   : > { %868 = vrot.lane.b32.xlu0 %v2527_v24, %s2357_s21  ;;  %v867_v24 = vpop.permute.xlu1 %866  ;;  %s2039_s21 = sshll.u32 %s2339_s27, 7  ;;  %s1894_s27 = scalar_lea.sflag [#allocation3], %s464_s30 }
 0x4cd   : > { %s2774_s2 = scalar_lea.hbm %s2835_s13, %s2039_s21 }
 0x4e7   : > { %1258 = vadd.xlane.f32.xlu1 %v1257_v60 }
 0x4eb   : > { %1255 = vadd.xlane.f32.xlu0 %v1254_v25 }
 0x53b   : > { %v1250_v26 = vpop.xlane.xlu1 %1249 }
 0x53c   : > { %2259 = vrcp.f32 %v1250_v26 }
 0x53f   : > { %v871_v62 = vpop.permute.xlu1 %870 }
 0x540   : > { %v878_v1 = vcombine.low %v867_v24, %v871_v62  ;;  %v879_v2 = vcombine.high %v867_v24, %v871_v62 }
 0x542   : > { %v886_v7 = vrot.slane %v878_v1, %v2544_v37  ;;  %v893_v9 = vrot.slane %v879_v2, %v2544_v37 }
 0x543   : > { %v1253_v63 = vpop.xlane.xlu0 %1252  ;;  %v873_v3 = vpop.permute.xlu1 %872 }
 0x544   : > { %2261 = vrcp.f32 %v1253_v63 }
 0x546   : > { %v2260_v38 = vpop.eup %2259 }
 0x547   : > { %v869_v4 = vpop.permute.xlu0 %868  ;;  %v1264_v49 = vmul.f32 %v2260_v38, %v2620_v51 }
 0x548   : > { %v894_v5 = vcombine.low %v869_v4, %v873_v3  ;;  %v895_v6 = vcombine.high %v869_v4, %v873_v3 }
 0x549   : > { %v1268_v57 = vpack.c.bf16 %v1264_v49, %v1264_v49 }
 0x54a   : > { %v902_v10 = vrot.slane %v894_v5, %v2544_v37  ;;  %v909_v11 = vrot.slane %v895_v6, %v2544_v37 }
 0x54c   : > { %v910_v12 = vcombine.low %v886_v7, %v902_v10  ;;  %v911_v13 = vcombine.high %v886_v7, %v902_v10  ;;  %v926_v14 = vcombine.low %v893_v9, %v909_v11  ;;  %v927_v15 = vcombine.high %v893_v9, %v909_v11 }
 0x54e   : > { %v918_v16 = vrot.slane %v910_v12, %v2555_v47  ;;  %v925_v17 = vrot.slane %v911_v13, %v2555_v47  ;;  %v934_v18 = vrot.slane %v926_v14, %v2555_v47  ;;  %v941_v19 = vrot.slane %v927_v15, %v2555_v47  ;;  %v2262_v43 = vpop.eup %2261 }
 0x54f   : > { %v1265_v50 = vmul.f32 %v2262_v43, %v2624_v52 }
 0x550   : > { %v946_v21 = vcombine.low %v918_v16, %v925_v17  ;;  %v2007_v22 = vcombine.high %v918_v16, %v925_v17  ;;  %v962_v29 = vcombine.low %v934_v18, %v941_v19  ;;  %v2008_v23 = vcombine.high %v934_v18, %v941_v19 }
 0x551   : > { %v1269_v58 = vpack.c.bf16 %v1265_v50, %v1265_v50 }
 0x552   : > { %v953_v27 = vrot.slane %v946_v21, %v2544_v37  ;;  %v961_v28 = vrot.slane %v2007_v22, %v2544_v37  ;;  %v969_v30 = vrot.slane %v962_v29, %v2544_v37  ;;  %v977_v32 = vrot.slane %v2008_v23, %v2544_v37 }
 0x554   : > { %v978_v33 = vcombine.low %v953_v27, %v961_v28  ;;  %v994_v34 = vcombine.low %v969_v30, %v977_v32  ;;  %v979_v35 = vcombine.high %v953_v27, %v961_v28  ;;  %v995_v36 = vcombine.high %v969_v30, %v977_v32  ;;  %v2237_v30 = vld [vmem:[%s2827_s5] sm:$0xff]  }
 0x556   : > { %v986_v39 = vrot.slane %v978_v33, %v2555_v47  ;;  %v1002_v40 = vrot.slane %v994_v34, %v2555_v47  ;;  %v993_v41 = vrot.slane %v979_v35, %v2555_v47  ;;  %v1009_v42 = vrot.slane %v995_v36, %v2555_v47 }
 0x558   : > { %v1010_v44 = vcombine.low %v986_v39, %v1002_v40  ;;  %v1011_v45 = vcombine.high %v986_v39, %v1002_v40  ;;  %v1012_v46 = vcombine.low %v993_v41, %v1009_v42  ;;  %v1013_v48 = vcombine.high %v993_v41, %v1009_v42  ;;  %v2238_v41 = vld [vmem:[%s2827_s5 + $0x8] sm:$0xff]  }
 0x55a   : > { %v1272_v31 = vpack.c.bf16 %v1010_v44, %v1010_v44  ;;  %v1273_v53 = vpack.c.bf16 %v1011_v45, %v1011_v45  ;;  %v1274_v55 = vpack.c.bf16 %v1012_v46, %v1012_v46  ;;  %v1275_v56 = vpack.c.bf16 %v1013_v48, %v1013_v48 }
 0x55c   : > { %v1281_v20 = vsel %vm1279_vm4, %v1272_v31, 0  ;;  %v1327_v54 = vsel %vm1279_vm4, %v1273_v53, 0  ;;  %v1373_v51 = vsel %vm1279_vm4, %v1274_v55, 0  ;;  %v1419_v52 = vsel %vm1279_vm4, %v1275_v56, 0 }
 0x55d   : > { %2109 = vmatpush3.bf16.msra.mxu1 %v1281_v20  ;;  %2115 = vmatpush3.bf16.msra.mxu0 %v1327_v54 }
 0x55e   : > { %2120 = vmatprep.subr.bf16.mxu1 %v2349_v8  ;;  %2126 = vmatprep.subr.bf16.mxu0 %v2349_v8 }
 0x560   : > { %2111 = vmatmul.mubr.msk.bf16.vlgmr.msra.gmra.mrb[4].mxu1 %vm1022_vm2, %v1268_v57  ;;  %2117 = vmatmul.mubr.msk.bf16.vlgmr.msra.gmra.mrb[16].mxu0 %vm1022_vm2, %v1269_v58 }
 0x561   : > { %2121 = vmatpush3.bf16.msra.mxu1 %v1373_v51  ;;  %2127 = vmatpush3.bf16.msra.mxu0 %v1419_v52 }
 0x562   : > { %2128 = vmatprep.mubr.msk.bf16.mxu0 %vm2350_vm1, %v2349_v8  ;;  %2122 = vmatprep.mubr.msk.bf16.mxu1 %vm2350_vm1, %v2349_v8 }
 0x563   : > { %2132 = vmatprep.subr.bf16.mxu1 %v2349_v8  ;;  %2140 = vmatprep.subr.bf16.mxu0 %v2349_v8 }
 0x574   : > { %v1259_v60 = vpop.xlane.xlu1 %1258 }
 0x575   : > { %2263 = vrcp.f32 %v1259_v60 }
 0x578   : > { %v1256_v25 = vpop.xlane.xlu0 %1255 }
 0x579   : > { %2265 = vrcp.f32 %v1256_v25 }
 0x57f   : > { %v2264_v24 = vpop.eup %2263 }
 0x580   : > { %v1267_v26 = vmul.f32 %v2264_v24, %v2631_v59 }
 0x582   : > { %v1271_v62 = vpack.c.bf16 %v1267_v26, %v1267_v26 }
 0x583   : > { %v2266_v63 = vpop.eup %2265 }
 0x584   : > { %v1266_v1 = vmul.f32 %v2266_v63, %v2635_v61  ;;  %2129 = vmatmul.mubr.msk.bf16.vlgmr.msra.gmra.mrb[20].mxu0 %vm1022_vm2, %v1271_v62 }
 0x585   : > { %2144 = vmatprep.mubr.msk.bf16.mxu0 %vm2350_vm1, %v2349_v8 }
 0x586   : > { %v1270_v2 = vpack.c.bf16 %v1266_v1, %v1266_v1 }
 0x588   : > { %2123 = vmatmul.mubr.msk.bf16.vlgmr.msra.gmra.mrb[8].mxu1 %vm1022_vm2, %v1270_v2  ;;  %v2019_v2 = vld [vmem:[%s2828_s6] ss:$0 sm:$0xff] }
 0x589   : > { %2136 = vmatprep.mubr.msk.bf16.mxu1 %vm2350_vm1, %v2349_v8  ;;  %2133 = vmatpush3.bf16.msra.mxu1 %v2237_v30 }
 0x58a   : > { %2134 = vmatprep.subr.bf16.mxu1 %v2349_v8 }
 0x58d   : > { %2135 = vmatpush3.bf16.msra.mxu1 %v2238_v41 }
 0x58e   : > { %2148 = vmatprep.subr.bf16.mxu1 %v2349_v8 }
 0x633   : > { %v1317_v3 = vpop.f32.mrb[4].mxu1  ;;  %v1363_v4 = vpop.f32.mrb[16].mxu0 }
 0x634   : > { %v2112_v5 = vpop.f32.mrb[5].mxu1  ;;  %v2118_v6 = vpop.f32.mrb[17].mxu0 }
 0x635   : > { %v1320_v59 = vpop.f32.mrb[6].mxu1  ;;  %v1366_v7 = vpop.f32.mrb[18].mxu0 }
 0x636   : > { %v2113_v9 = vpop.f32.mrb[7].mxu1  ;;  %v2119_v10 = vpop.f32.mrb[19].mxu0 }
 0x657   : > { %v1455_v61 = vpop.f32.mrb[20].mxu0 }
 0x658   : > { %v1477_v11 = vcombine.low %v1363_v4, %v1455_v61  ;;  %v1478_v12 = vcombine.high %v1363_v4, %v1455_v61  ;;  %v2130_v13 = vpop.f32.mrb[21].mxu0 }
 0x659   : > { %v1458_v14 = vpop.f32.mrb[22].mxu0 }
 0x65a   : > { %v2131_v15 = vpop.f32.mrb[23].mxu0  ;;  %v1485_v22 = vrot.slane %v1477_v11, %v2544_v37  ;;  %v1492_v29 = vrot.slane %v1478_v12, %v2544_v37  ;;  %v2239_v14 = vld [vmem:[%s2831_s9] sm:$0xff]  }
 0x65b   : > { %v1409_v16 = vpop.f32.mrb[8].mxu1  ;;  %2141 = vmatpush3.bf16.msra.mxu0 %v2239_v14  ;;  %v2241_v15 = vld [vmem:[%s2833_s11] sm:$0xff]  }
 0x65c   : > { %v1461_v17 = vcombine.low %v1317_v3, %v1409_v16  ;;  %v1462_v18 = vcombine.high %v1317_v3, %v1409_v16  ;;  %v2124_v19 = vpop.f32.mrb[9].mxu1  ;;  %2142 = vmatprep.subr.bf16.mxu0 %v2349_v8  ;;  %v2242_v16 = vld [vmem:[%s2833_s11 + $0x8] sm:$0xff]  }
 0x65d   : > { %v1412_v21 = vpop.f32.mrb[10].mxu1  ;;  %v2245_v19 = vld [vmem:[%s2833_s11 + $0x20] sm:$0xff]  }
 0x65e   : > { %v1469_v23 = vrot.slane %v1461_v17, %v2544_v37  ;;  %v1476_v27 = vrot.slane %v1462_v18, %v2544_v37  ;;  %v2125_v28 = vpop.f32.mrb[11].mxu1  ;;  %v2243_v17 = vld [vmem:[%s2833_s11 + $0x10] sm:$0xff]   ;;  %v2244_v18 = vld [vmem:[%s2833_s11 + $0x18] sm:$0xff]   ;;  %v2246_v21 = vld [vmem:[%s2833_s11 + $0x28] sm:$0xff]  }
 0x65f   : > { %v2023_v28 = vld [vmem:[%s2829_s7] ss:$0 sm:$0xff] }
 0x660   : > { %v1493_v32 = vcombine.low %v1469_v23, %v1485_v22  ;;  %v1494_v33 = vcombine.high %v1469_v23, %v1485_v22  ;;  %v1509_v34 = vcombine.low %v1476_v27, %v1492_v29  ;;  %v1510_v35 = vcombine.high %v1476_v27, %v1492_v29 }
 0x662   : > { %v1501_v36 = vrot.slane %v1493_v32, %v2555_v47  ;;  %v1508_v38 = vrot.slane %v1494_v33, %v2555_v47  ;;  %v1517_v39 = vrot.slane %v1509_v34, %v2555_v47  ;;  %v1524_v40 = vrot.slane %v1510_v35, %v2555_v47  ;;  %v2024_v32 = vld [vmem:[%s2830_s8] ss:$0 sm:$0xff] }
 0x664   : > { %v1529_v42 = vcombine.low %v1501_v36, %v1508_v38  ;;  %v2017_v43 = vcombine.high %v1501_v36, %v1508_v38  ;;  %v1545_v44 = vcombine.low %v1517_v39, %v1524_v40  ;;  %v2018_v45 = vcombine.high %v1517_v39, %v1524_v40  ;;  %v2247_v36 = vld [vmem:[%s2833_s11 + $0x30] sm:$0xff]   ;;  %v2248_v38 = vld [vmem:[%s2833_s11 + $0x38] sm:$0xff]   ;;  %v2025_v39 = vld [vmem:[%s2832_s10] ss:$0 sm:$0xff] }
 0x666   : > { %v1536_v46 = vrot.slane %v1529_v42, %v2544_v37  ;;  %v1544_v48 = vrot.slane %v2017_v43, %v2544_v37  ;;  %v1552_v49 = vrot.slane %v1545_v44, %v2544_v37  ;;  %v1560_v50 = vrot.slane %v2018_v45, %v2544_v37 }
 0x668   : > { %v1562_v31 = vcombine.high %v1536_v46, %v1544_v48  ;;  %v1578_v53 = vcombine.high %v1552_v49, %v1560_v50  ;;  %v1561_v20 = vcombine.low %v1536_v46, %v1544_v48  ;;  %v1577_v54 = vcombine.low %v1552_v49, %v1560_v50 }
 0x66a   : > { %v1576_v55 = vrot.slane %v1562_v31, %v2555_v47  ;;  %v1592_v56 = vrot.slane %v1578_v53, %v2555_v47  ;;  %v1569_v57 = vrot.slane %v1561_v20, %v2555_v47  ;;  %v1585_v58 = vrot.slane %v1577_v54, %v2555_v47 }
 0x66c   : > { %v1595_v51 = vcombine.low %v1576_v55, %v1592_v56  ;;  %v1594_v52 = vcombine.high %v1569_v57, %v1585_v58  ;;  %v1596_v60 = vcombine.high %v1576_v55, %v1592_v56  ;;  %v1593_v25 = vcombine.low %v1569_v57, %v1585_v58 }
 0x66e   : > { %1602 = vrot.lane.b32.xlu1 %v1595_v51, %s2358_s15  ;;  %1598 = vrot.lane.b32.xlu0 %v1594_v52, %s2359_s17  ;;  %s1996_s15 = sshll.u32 %s464_s30, 3  ;;  %s2361_s17 = smov [#allocation2]  }
 0x66f   : > { %s466_s22 = scalar_lea.vmem [#allocation2], %s1996_s15 }
 0x670   : > { %s1908_s23 = sshll.u32 %s466_s22, 4  ;;  %s2776_s23 = int_to_ptr.vmem [resolvable:$true] %s1908_s23 }
 0x671   : > { %s2269_s15 = scalar_lea.vmem %s2776_s23, 128 }
 0x672   : > { %1606 = vrot.lane.b32.xlu0 %v1596_v60, %s2360_s20  ;;  %p2270_p12 = scmp.ne.s32.totalorder %s2776_s23, %s2269_s15  ;;  %s2273_s20 = sshll.u32 %s2361_s17, 4  ;;  %s2274_s20 = int_to_ptr.vmem [resolvable:$false] %s2273_s20 }
 0x673   : > { %s2275_s3 = scalar_lea.vmem %s2274_s20, 256  ;;  %p2276_p1 = scmp.lt.s32.totalorder %s2776_s23, %s2274_s20 }
 0x674   : > { %p2271_p13 = pnand %p2270_p12, %p2472_p4  ;;  %p2277_p2 = scmp.lt.s32.totalorder %s2275_s3, %s2269_s15 }
 0x676   : > { %p2272_p0 = pneg %p2271_p13  ;;  %p2278_p3 = por %p2277_p2, %p2276_p1 }
 0x678   : > { %p2279_p5 = pnand %p2278_p3, %p2272_p0 }
 0x6e0   : > { %v1599_v37 = vpop.permute.xlu0 %1598  ;;  %v1603_v24 = vpop.permute.xlu1 %1602 }
 0x6e1   : > { %v1609_v26 = vsel %vm1022_vm2, %v1593_v25, %v1599_v37 }
 0x6e2   : > { %v1611_v63 = vsel %vm1610_vm5, %v1609_v26, %v1603_v24 }
 0x6e4   : > { %v1607_v62 = vpop.permute.xlu0 %1606 }
 0x6e5   : > { %v1613_v1 = vsel %vm1612_vm6, %v1611_v63, %v1607_v62 }
 0x6e6   : > { %v1614_v47 = vpack.c.bf16 %v1613_v1, %v1613_v1 }
 0x6e8   : > { %2137 = vmatmul.mubr.msk.bf16.vlgmr.msra.gmra.mrb[12].mxu1 %vm483_vm0, %v1614_v47 }
 0x6e9   : > { %2164 = vmatprep.mubr.msk.bf16.mxu1 %vm2350_vm1, %v2349_v8  ;;  %2149 = vmatpush3.bf16.msra.mxu1 %v2241_v15 }
 0x6ea   : > { %2150 = vmatprep.subr.bf16.mxu1 %v2349_v8 }
 0x6ed   : > { %2151 = vmatpush3.bf16.msra.mxu1 %v2242_v16 }
 0x6ee   : > { %2152 = vmatprep.subr.bf16.mxu1 %v2349_v8 }
 0x6f1   : > { %2153 = vmatpush3.bf16.msra.mxu1 %v2243_v17 }
 0x6f2   : > { %2154 = vmatprep.subr.bf16.mxu1 %v2349_v8 }
 0x6f5   : > { %2155 = vmatpush3.bf16.msra.mxu1 %v2244_v18 }
 0x6f6   : > { %2156 = vmatprep.subr.bf16.mxu1 %v2349_v8 }
 0x6f9   : > { %2157 = vmatpush3.bf16.msra.mxu1 %v2245_v19 }
 0x6fa   : > { %2158 = vmatprep.subr.bf16.mxu1 %v2349_v8 }
 0x6fd   : > { %2159 = vmatpush3.bf16.msra.mxu1 %v2246_v21 }
 0x6fe   : > { %2160 = vmatprep.subr.bf16.mxu1 %v2349_v8 }
 0x701   : > { %2161 = vmatpush3.bf16.msra.mxu1 %v2247_v36 }
 0x702   : > { %2162 = vmatprep.subr.bf16.mxu1 %v2349_v8  ;;  %v2029_v8 = vld [vmem:[%s2834_s12] ss:$0 sm:$0xff] }
 0x705   : > { %2163 = vmatpush3.bf16.msra.mxu1 %v2248_v38 }
 0x7bb   : > { %v1675_v3 = vpop.f32.mrb[12].mxu1 }
 0x7bc   : > { %v1676_v4 = vadd.f32 %v2019_v2, %v1675_v3  ;;  %v2138_v5 = vpop.f32.mrb[13].mxu1 }
 0x7bd   : > { %v1678_v6 = vpop.f32.mrb[14].mxu1 }
 0x7be   : > { %v2711_v59 = vadd.f32 %v1676_v4, %v2492_v0  ;;  %v2139_v7 = vpop.f32.mrb[15].mxu1  ;;  %v2240_v0 = vld [vmem:[%s2831_s9 + $0x8] sm:$0xff]  }
 0x7bf   : > { %2143 = vmatpush3.bf16.msra.mxu0 %v2240_v0 }
 0x7c0   : > { %v1684_v9 = vsel %vm483_vm0, %v2711_v59, 0.0 }
 0x7c1   : > { %1685 = vadd.xlane.f32.xlu1 %v1684_v9 }
 0x84e   : > { %v1686_v10 = vpop.xlane.xlu1 %1685 }
 0x84f   : > { %v1687_v61 = vmul.f32 0.03125, %v1686_v10 }
 0x851   : > { %v1688_v11 = vsub.f32 %v2711_v59, %v1687_v61 }
 0x853   : > { %v1689_v12 = vmul.f32 %v1688_v11, %v1688_v11 }
 0x855   : > { %v1690_v13 = vsel %vm483_vm0, %v1689_v12, 0.0 }
 0x856   : > { %1691 = vadd.xlane.f32.xlu0 %v1690_v13 }
 0x8e3   : > { %v1692_v22 = vpop.xlane.xlu0 %1691 }
 0x8e4   : > { %v1693_v29 = vmul.f32 0.03125, %v1692_v22 }
 0x8e6   : > { %v1694_v23 = vadd.f32 1e-05, %v1693_v29 }
 0x8e8   : > { %2267 = vrsqrt.f32 %v1694_v23 }
 0x8f2   : > { %v2268_v27 = vpop.eup %2267 }
 0x8f3   : > { %v1696_v30 = vmul.f32 %v2268_v27, %v1688_v11 }
 0x8f5   : > { %v1703_v33 = vmul.f32 %v2023_v28, %v1696_v30 }
 0x8f7   : > { %v1710_v34 = vadd.f32 %v2024_v32, %v1703_v33 }
 0x8f9   : > { %v1711_v35 = vpack.c.bf16 %v1710_v34, %v1710_v34 }
 0x8fb   : > { %2145 = vmatmul.mubr.msk.bf16.vlgmr.msra.gmra.mrb[24].mxu0 %vm483_vm0, %v1711_v35 }
 0x9ce   : > { %v1772_v40 = vpop.f32.mrb[24].mxu0 }
 0x9cf   : > { %v1773_v41 = vadd.f32 %v2025_v39, %v1772_v40  ;;  %v2146_v42 = vpop.f32.mrb[25].mxu0 }
 0x9d0   : > { %v1775_v43 = vpop.f32.mrb[26].mxu0 }
 0x9d1   : > { %v1778_v44 = vmax.f32 %v1773_v41, 0.0  ;;  %v2147_v45 = vpop.f32.mrb[27].mxu0 }
 0x9d3   : > { %v1779_v46 = vpack.c.bf16 %v1778_v44, %v1778_v44 }
 0x9d5   : > { %2165 = vmatmul.mubr.bf16.vlgmr.msra.gmra.mrb[16].mxu1 %v1779_v46 }
 0xaa8   : > { %v1885_v48 = vpop.f32.mrb[16].mxu1 }
 0xaa9   : > { %v1886_v49 = vadd.f32 %v2029_v8, %v1885_v48  ;;  %v2166_v50 = vpop.f32.mrb[17].mxu1 }
 0xaaa   : > { %v1888_v31 = vpop.f32.mrb[18].mxu1 }
 0xaab   : > { %v1891_v53 = vadd.f32 %v1886_v49, %v2711_v59  ;;  %v2167_v20 = vpop.f32.mrb[19].mxu1 }
 0xaad   : > { %1892 = vst.msk [vmem:[%s466_s22] sm:$0xff] %vm483_vm0, %v1891_v53 }
 0xaae   : > { %2282 = shalt.err (!%p2279_p5)
}
 0xaaf   : > { %s2283_s1 = scalar_lea.hbm %s2774_s2, 128  ;;  %s2287_s22 = scalar_lea.hbm %s2835_s13, 256 }
 0xab0   : > { %p2284_p6 = scmp.ne.s32.totalorder %s2774_s2, %s2283_s1  ;;  %p2288_p10 = scmp.lt.u32.totalorder %s2774_s2, %s2835_s13 }
 0xab1   : > { %p2289_p11 = scmp.lt.u32.totalorder %s2287_s22, %s2283_s1  ;;  %p2291_p13 = scmp.lt.u32.totalorder %s2283_s1, %s2774_s2 }
 0xab2   : > { %p2285_p7 = pnand %p2284_p6, %p2472_p4 }
 0xab3   : > { %p2290_p12 = por %p2289_p11, %p2288_p10 }
 0xab4   : > { %p2286_p9 = pneg %p2285_p7 }
 0xab5   : > { %p2292_p0 = por %p2291_p13, %p2290_p12 }
 0xab7   : > { %p2293_p1 = pnand %p2292_p0, %p2286_p9 }
 0xab9   : > { %2296 = shalt.err (!%p2293_p1)
}
 0xaba   : > { %2168 = dma.vmem_to_hbm [thread:$0]  (%p2472_p4), %s2776_s23, 128, %s2774_s2, %s1894_s27  }
 0xabb PF: > { %p2174_p2 = scmp.ge.s32.totalorder %s2347_s0, 2  ;;  %s1920_s3 = sand.u32 1, %s2327_s24  }
 0xabc   : > { %s1921_s15 = scalar_lea.sflag [#allocation3], %s1920_s3 }
 0xabd   : > { %p2171_p3 = pnand %p2174_p2, %p2479_p8 }
 0xabf   : > { %2322 = dma.done.wait (!%p2171_p3), %s1921_s15, 128  }
 0xac0   : > { %2324 = vsyncadd (!%p2171_p3), %s1921_s15, 4294967168  ;;  %s26_s0 = sadd.s32 1, %s2347_s0   ;;  %s2844_s24 = smov %s2331_s25 }
 0xac1   : > { %p23_p5 = scmp.ge.s32.totalorder %s26_s0, 4   ;;  %s2845_s25 = smov %s2335_s26 }
 0xac2   : > { %s2846_s26 = smov %s2485_s19  ;;  %s2847_s27 = smov %s2343_s28 }
 0xac3   : > { %s2848_s28 = smov %s2850_s14  ;;  %25 = sbr.rel (!%p23_p5) target bundleno = 8 (0x8), region = 110 }
 0xaca   :  { %1926 = vsyncpa [#allocation3], 1 }
 0xacb   :  { %1928 = vsyncpa [#allocation3 + $0x1], 1 }

</bundles_post_ra>
